<compile_context>
chip_gen: v6e
topology: v6e:2x2x1
jax: 0.10.0
libtpu: 0.0.40
codegen_flags: <defaults>
</compile_context>

<pallas_src>
import functools

import jax
import jax.numpy as jnp
from jax.experimental import pallas as pl
from jax.experimental.pallas import tpu as pltpu


def _log_taylor_softmax_kernel(x_ref, o_ref, *, n: int):
    # x_ref block shape: (block_b, C) — C is the full (logical) class dim, so
    # the lane-axis reduce below is correctly masked by the compiler even when
    # C is not a multiple of 128.
    x = x_ref[...].astype(jnp.float32)

    # Horner evaluation of fn = sum_{i=0..n} x^i / i!  (precomputed 1/i!).
    inv_fact = [1.0]
    f = 1.0
    for i in range(1, n + 1):
        f *= float(i)
        inv_fact.append(1.0 / f)
    fn = jnp.full_like(x, inv_fact[n])
    for i in range(n - 1, -1, -1):
        fn = fn * x + inv_fact[i]

    denom = jnp.sum(fn, axis=1, keepdims=True)   # lane-axis reduce (XLU)
    out = jnp.log(fn) - jnp.log(denom)           # EUP log, VPU subtract
    o_ref[...] = out.astype(o_ref.dtype)


def log_taylor_softmax_v1(x: jax.Array, n: int = 2) -> jax.Array:
    """LogTaylorSoftmaxV1.forward for x of shape [B, C], dim=1."""
    assert n % 2 == 0 and n > 0
    B, C = x.shape
    dtype = x.dtype
    itemsize = jnp.dtype(dtype).itemsize
    sublane_pack = {4: 8, 2: 16, 1: 32}.get(itemsize, 8)

    # Physical lane footprint of one row in VMEM (for budgeting only; the
    # logical block keeps the exact class dim C).
    C_lane = ((C + 127) // 128) * 128

    # --- block_b selection -------------------------------------------------
    # Target ~4 MiB of f32 work per grid step (amortizes per-step overhead at
    # v7x bandwidth; harmless on v5e/v6e), but never at the cost of having a
    # 1-step grid: cap block_b so the grid has >= MIN_STEPS steps whenever the
    # batch allows it (megacore sharding + pipeline overlap).
    TARGET_F32_TILE_BYTES = 4 * 1024 * 1024
    MIN_STEPS = 4

    if B <= sublane_pack:
        block_b = B                     # single block; block dim == full dim
    else:
        bb_tile = max(
            sublane_pack,
            (TARGET_F32_TILE_BYTES // (C_lane * 4)) // sublane_pack * sublane_pack)
        bb_steps = max(
            sublane_pack,
            (pl.cdiv(B, MIN_STEPS) // sublane_pack) * sublane_pack)
        block_b = min(bb_tile, bb_steps)
        b_ceil = pl.cdiv(B, sublane_pack) * sublane_pack
        block_b = min(block_b, b_ceil)

    grid_steps = pl.cdiv(B, block_b)

    # --- VMEM budget ---------------------------------------------------------
    block_b_phys = pl.cdiv(block_b, sublane_pack) * sublane_pack
    tile_bytes = block_b_phys * C_lane * itemsize      # one in (or out) tile
    f32_tile_bytes = block_b_phys * C_lane * 4         # one f32 intermediate
    # in + out double-buffered, ~4 f32 intermediates live, plus headroom.
    budget = 4 * tile_bytes + 4 * f32_tile_bytes + (8 << 20)

    # Cap below the physical per-core VMEM (v7x: 64 MiB; v5e/v6e: 128 MiB).
    try:
        vmem_phys = int(getattr(pltpu.get_tpu_info(), "vmem_capacity_bytes",
                                64 << 20))
    except Exception:
        vmem_phys = 64 << 20
    vmem_cap = max(16 << 20, vmem_phys - (8 << 20))
    vmem_limit = int(min(budget, vmem_cap))

    kernel = functools.partial(_log_taylor_softmax_kernel, n=n)

    cost = pl.CostEstimate(
        flops=6 * B * C,
        transcendentals=B * C + B,
        bytes_accessed=2 * B * C * itemsize,
    )

    out = pl.pallas_call(
        kernel,
        out_shape=jax.ShapeDtypeStruct((B, C), dtype),
        grid_spec=pltpu.PrefetchScalarGridSpec(
            num_scalar_prefetch=0,
            grid=(grid_steps,),
            in_specs=[pl.BlockSpec((block_b, C), lambda i: (i, 0))],
            out_specs=pl.BlockSpec((block_b, C), lambda i: (i, 0)),
        ),
        compiler_params=pltpu.CompilerParams(
            dimension_semantics=("parallel",),
            vmem_limit_bytes=vmem_limit,
        ),
        cost_estimate=cost,
    )(x)
    return out


def _reference(x, n=2):
    # pure-JAX reference matching PyTorch taylor_softmax_v1(use_log=True)
    fn = jnp.ones_like(x)
    denor = 1.0
    for i in range(1, n + 1):
        denor *= i
        fn = fn + jnp.power(x, i) / denor
    out = fn / jnp.sum(fn, axis=1, keepdims=True)
    return jnp.log(out)


if __name__ == "__main__":
    key = jax.random.PRNGKey(0)

    # Classification-head sized logits: batch=8, classes=128 (aligned case).
    B, C = 8, 128
    x = jax.random.normal(key, (B, C), dtype=jnp.float32)
    out = jax.block_until_ready(log_taylor_softmax_v1(x, n=2))
    ref = _reference(x, n=2)
    assert out.shape == (B, C) and out.dtype == x.dtype
    assert jnp.allclose(out, ref, atol=1e-5, rtol=1e-5)

    # Non-lane-aligned class dim, batch smaller than a sublane pack.
    x2 = jax.random.normal(jax.random.PRNGKey(1), (6, 100), dtype=jnp.float32)
    out2 = jax.block_until_ready(log_taylor_softmax_v1(x2, n=2))
    ref2 = _reference(x2, n=2)
    assert out2.shape == (6, 100) and out2.dtype == x2.dtype
    assert jnp.allclose(out2, ref2, atol=1e-5, rtol=1e-5)

    # Partial last batch block (B=20 with block_b=8 -> 3 steps, last partial),
    # non-aligned C, and n=4.
    x3 = jax.random.normal(jax.random.PRNGKey(2), (20, 100), dtype=jnp.float32)
    out3 = jax.block_until_ready(log_taylor_softmax_v1(x3, n=4))
    ref3 = _reference(x3, n=4)
    assert out3.shape == (20, 100) and out3.dtype == x3.dtype
    assert jnp.allclose(out3, ref3, atol=1e-5, rtol=1e-5)

    print("KERNEL_OK")
</pallas_src>

<mosaic_0001>
module attributes {stable_mosaic.version = 11 : i64} {
  func.func @_log_taylor_softmax_kernel(%arg0: i32, %arg1: memref<8x128xf32, #tpu.memory_space<vmem>>, %arg2: memref<8x128xf32, #tpu.memory_space<vmem>>) attributes {dimension_semantics = [#tpu.dimension_semantics<parallel>], iteration_bounds = array<i64: 1>, scalar_prefetch = 0 : i64, scratch_operands = 0 : i64, tpu.core_type = #tpu.core_type<tc>, window_params = [{transform_indices = @transform_0, window_bounds = array<i64: 8, 128>}, {transform_indices = @transform_1, window_bounds = array<i64: 8, 128>}]} {
    %c0 = arith.constant 0 : index
    %c0_0 = arith.constant 0 : index
    %0 = vector.load %arg1[%c0, %c0_0] : memref<8x128xf32, #tpu.memory_space<vmem>>, vector<8x128xf32>
    %cst = arith.constant 5.000000e-01 : f32
    %1 = vector.broadcast %cst : f32 to vector<8x128xf32>
    %2 = arith.mulf %1, %0 : vector<8x128xf32>
    %cst_1 = arith.constant 1.000000e+00 : f32
    %3 = vector.broadcast %cst_1 : f32 to vector<8x128xf32>
    %4 = arith.addf %2, %3 : vector<8x128xf32>
    %5 = arith.mulf %4, %0 : vector<8x128xf32>
    %cst_2 = arith.constant 1.000000e+00 : f32
    %6 = vector.broadcast %cst_2 : f32 to vector<8x128xf32>
    %7 = arith.addf %5, %6 : vector<8x128xf32>
    %cst_3 = arith.constant dense<0.000000e+00> : vector<8xf32>
    %8 = vector.multi_reduction <add>, %7, %cst_3 [1] : vector<8x128xf32> to vector<8xf32>
    %9 = vector.shape_cast %8 : vector<8xf32> to vector<8x1xf32>
    %10 = math.log %7 : vector<8x128xf32>
    %11 = math.log %9 : vector<8x1xf32>
    %12 = vector.broadcast %11 : vector<8x1xf32> to vector<8x128xf32>
    %13 = arith.subf %10, %12 : vector<8x128xf32>
    %c0_4 = arith.constant 0 : index
    %c0_5 = arith.constant 0 : index
    %14 = vector.load %arg2[%c0_4, %c0_5] : memref<8x128xf32, #tpu.memory_space<vmem>>, vector<8x128xf32>
    tpu.vector_store %arg2[%c0_4, %c0_5], %13 {strides = array<i32>} : memref<8x128xf32, #tpu.memory_space<vmem>>, vector<8x128xf32>,
    return
  }
  func.func @transform_0(%arg0: i32) -> (i32, i32) {
    %c0_i32 = arith.constant 0 : i32
    %c0_i32_0 = arith.constant 0 : i32
    return %arg0, %c0_i32 : i32, i32
  }
  func.func @transform_1(%arg0: i32) -> (i32, i32) {
    %c0_i32 = arith.constant 0 : i32
    %c0_i32_0 = arith.constant 0 : i32
    return %arg0, %c0_i32 : i32, i32
  }
}

</mosaic_0001>

<bundles_post_ra>
// kernel: tpu_custom_call.1
= control target key start
LH: loop header
LB: loop body
LE: loop exit
PB: predicated region body
PF: predicated region fallthrough
CT: control target
= control target key end

     0   :  { %6 = vsyncpa [#allocation3], 0  ;;  %s117_s0 = inlined_call_operand.hbm [shape: f32[8,128], index: 0, kind: input, shape index: {}]   ;;  %s118_s1 = inlined_call_operand.hbm [shape: f32[8,128], index: 1, kind: output, shape index: {}]  }
   0x1   :  { %7 = vsyncpa [#allocation4], 0  ;;  %s99_s6 = smov [#allocation2]  }
   0x2   :  { %s14_s7 = sshll.u32 %s99_s6, 4  ;;  %s15_s7 = int_to_ptr.vmem [resolvable:$true] %s14_s7 }
   0x3   :  { %s63_s8 = scalar_lea.vmem %s15_s7, 128  ;;  %p68_p1 = scmp.lt.s32.totalorder %s15_s7, %s15_s7 }
   0x4   :  { %p64_p0 = scmp.ne.s32.totalorder %s15_s7, %s63_s8  ;;  %p69_p2 = scmp.lt.s32.totalorder %s63_s8, %s63_s8 }
   0x6   :  { %p70_p3 = por %p69_p2, %p68_p1 }
   0x8   :  { %p71_p4 = pnand %p70_p3, %p64_p0 }
   0xa   :  { %74 = shalt.err (!%p71_p4)
}
   0xb   :  { %17 = dma.hbm_to_vmem [thread:$0]  %s117_s0, 128, %s15_s7, [#allocation3]  }
   0xc   :  { %95 = dma.done.wait [#allocation3], 128  }
   0xd   :  { %96 = vsyncadd [#allocation3], 4294967168  ;;  %v21_v0 = vld [vmem:[#allocation2] sm:$0xff]  ;;  %s100_s11 = smov [#allocation5]  }
   0xe   :  { %v22_v1 = vmul.f32 0.5, %v21_v0  ;;  %s40_s12 = sshll.u32 %s100_s11, 4  ;;  %s41_s12 = int_to_ptr.vmem [resolvable:$true] %s40_s12 }
   0xf   :  { %s75_s0 = scalar_lea.vmem %s41_s12, 128  ;;  %p80_p6 = scmp.lt.s32.totalorder %s41_s12, %s41_s12 }
  0x10   :  { %v23_v2 = vadd.f32 1.0, %v22_v1  ;;  %p76_p5 = scmp.ne.s32.totalorder %s41_s12, %s75_s0  ;;  %p81_p7 = scmp.lt.s32.totalorder %s75_s0, %s75_s0 }
  0x12   :  { %v24_v3 = vmul.f32 %v23_v2, %v21_v0  ;;  %p82_p8 = por %p81_p7, %p80_p6 }
  0x14   :  { %v25_v4 = vadd.f32 1.0, %v24_v3  ;;  %p83_p9 = pnand %p82_p8, %p76_p5 }
  0x16   :  { %26 = vadd.xlane.f32.xlu0 %v25_v4  ;;  %51 = vlog2.f32 %v25_v4 }
  0x23   :  { %v52_v6 = vpop.eup %51 }
  0x24   :  { %v29_v7 = vmul.f32 0.6931472, %v52_v6 }
  0x9f   :  { %v27_v5 = vpop.xlane.xlu0 %26 }
  0xa0   :  { %53 = vlog2.f32 %v27_v5 }
  0xad   :  { %v54_v8 = vpop.eup %53 }
  0xae   :  { %v31_v9 = vmul.f32 0.6931472, %v54_v8 }
  0xb0   :  { %v32_v10 = vsub.f32 %v29_v7, %v31_v9 }
  0xb2   :  { %33 = vst [vmem:[#allocation5] sm:$0xff] %v32_v10 }
  0xb3   :  { %86 = shalt.err (!%p83_p9)
}
  0xb4   :  { %43 = dma.vmem_to_hbm [thread:$0]  %s41_s12, 128, %s118_s1, [#allocation4]  }
  0xb5   :  { %97 = dma.done.wait [#allocation4], 128  }
  0xb6   :  { %98 = vsyncadd [#allocation4], 4294967168 }
  0xb7   :  { %47 = vsyncpa [#allocation3], 1 }
  0xb8   :  { %48 = vsyncpa [#allocation4], 1 }

</bundles_post_ra>
